<compile_context>
chip_gen: v5e
topology: v5e:2x2
jax: 0.10.0
libtpu: 0.0.40
codegen_flags: <defaults>
</compile_context>

<pallas_src>
import math
from functools import partial
from typing import NamedTuple

import jax
import jax.numpy as jnp
from jax.experimental import pallas as pl
from jax.experimental.pallas import tpu as pltpu


class DecoderDims(NamedTuple):
    E: int      # embb_dim
    H: int      # hidd_dim
    Hp: int     # hidd_dim padded to multiple of 128
    Dmax: int   # max(padded embb_dim, padded hidd_dim)
    L: int      # n_layers


def _round_up(x, m):
    return (x + m - 1) // m * m


# ----------------------------------------------------------------------------
# Kernel
# ----------------------------------------------------------------------------
def _decoder_lstm_kernel(x0_ref, h_ref, c_ref, wih_ref, whh_ref, b_ref,
                         h_out_ref, c_out_ref, x_scr):
    """Grid = (batch_tile, layer). One LSTM layer step per invocation.

    x0_ref : (Bt, Dmax)      f32   initial (padded) input, fetched once per tile
    h_ref  : (1, Bt, Hp)     f32   previous hidden state of this layer
    c_ref  : (1, Bt, Hp)     f32   previous cell state of this layer
    wih_ref: (1, Dmax, 4Hp)  bf16  input->gates weights (zero-padded rows)
    whh_ref: (1, Hp,  4Hp)   bf16  hidden->gates weights
    b_ref  : (1, 1,  4Hp)    f32   b_ih + b_hh
    x_scr  : (Bt, Dmax)      f32   carried inter-layer activation (VMEM)
    """
    layer = pl.program_id(1)
    Hp = h_ref.shape[-1]

    @pl.when(layer == 0)
    def _():
        # Load this batch tile's (padded) input into the carried slab.
        x_scr[...] = x0_ref[...].astype(jnp.float32)

    x_bf16 = x_scr[...].astype(jnp.bfloat16)
    h_bf16 = h_ref[0].astype(jnp.bfloat16)
    c = c_ref[0].astype(jnp.float32)

    # Two MXU matmuls (bf16 inputs, f32 accumulate) + bias.
    gates = (jnp.dot(x_bf16, wih_ref[0], preferred_element_type=jnp.float32)
             + jnp.dot(h_bf16, whh_ref[0], preferred_element_type=jnp.float32)
             + b_ref[0].astype(jnp.float32))

    # PyTorch gate order i, f, g, o; Hp is a multiple of 128 -> lane aligned.
    i_g = jax.nn.sigmoid(gates[:, 0 * Hp:1 * Hp])
    f_g = jax.nn.sigmoid(gates[:, 1 * Hp:2 * Hp])
    g_g = jnp.tanh(gates[:, 2 * Hp:3 * Hp])
    o_g = jax.nn.sigmoid(gates[:, 3 * Hp:4 * Hp])

    c_new = f_g * c + i_g * g_g
    h_new = o_g * jnp.tanh(c_new)

    h_out_ref[0] = h_new.astype(h_out_ref.dtype)
    c_out_ref[0] = c_new.astype(c_out_ref.dtype)

    # Carry activation to the next layer. Columns [Hp:Dmax) keep their previous
    # (finite) contents; the corresponding w_ih rows are zero-padded, so they
    # contribute nothing.
    x_scr[:, 0:Hp] = h_new


def _decoder_pallas(x0, hidden, cell, w_ih, w_hh, b, *, bt):
    L, Bp, Hp = hidden.shape
    Dmax = x0.shape[-1]
    nb = Bp // bt
    grid = (nb, L)

    in_specs = [
        pl.BlockSpec((bt, Dmax), lambda bi, l: (bi, 0)),           # x0
        pl.BlockSpec((1, bt, Hp), lambda bi, l: (l, bi, 0)),       # hidden
        pl.BlockSpec((1, bt, Hp), lambda bi, l: (l, bi, 0)),       # cell
        pl.BlockSpec((1, Dmax, 4 * Hp), lambda bi, l: (l, 0, 0)),  # w_ih
        pl.BlockSpec((1, Hp, 4 * Hp), lambda bi, l: (l, 0, 0)),    # w_hh
        pl.BlockSpec((1, 1, 4 * Hp), lambda bi, l: (l, 0, 0)),     # bias
    ]
    out_specs = (
        pl.BlockSpec((1, bt, Hp), lambda bi, l: (l, bi, 0)),       # h'
        pl.BlockSpec((1, bt, Hp), lambda bi, l: (l, bi, 0)),       # c'
    )
    out_shape = (jax.ShapeDtypeStruct((L, Bp, Hp), jnp.float32),
                 jax.ShapeDtypeStruct((L, Bp, Hp), jnp.float32))

    # VMEM budget: double-buffered per-layer weight/state tiles + x0 + scratch.
    wih_bytes = Dmax * 4 * Hp * w_ih.dtype.itemsize
    whh_bytes = Hp * 4 * Hp * w_hh.dtype.itemsize
    b_bytes = 4 * Hp * 4
    state_bytes = 4 * bt * Hp * 4            # h,c in + h,c out blocks (f32)
    x0_bytes = bt * Dmax * 4
    scratch_bytes = bt * Dmax * 4
    vmem_bytes = (2 * (wih_bytes + whh_bytes + b_bytes + state_bytes + x0_bytes)
                  + scratch_bytes)
    vmem_limit = int(min(max(2 * vmem_bytes, 8 << 20), 64 << 20))

    grid_spec = pltpu.PrefetchScalarGridSpec(
        num_scalar_prefetch=0,
        grid=grid,
        in_specs=in_specs,
        out_specs=out_specs,
        scratch_shapes=[pltpu.VMEM((bt, Dmax), jnp.float32)],
    )

    return pl.pallas_call(
        _decoder_lstm_kernel,
        out_shape=out_shape,
        grid_spec=grid_spec,
        # hidden -> h_out, cell -> c_out (in-place state update).
        input_output_aliases={1: 0, 2: 1},
        compiler_params=pltpu.CompilerParams(
            dimension_semantics=("parallel", "arbitrary"),
            vmem_limit_bytes=vmem_limit,
        ),
    )(x0, hidden, cell, w_ih, w_hh, b)


# ----------------------------------------------------------------------------
# Parameter init / packing
# ----------------------------------------------------------------------------
def init_decoder_params(key, embb_dim, hidd_dim, n_layers):
    """PyTorch-style init U(-1/sqrt(H), 1/sqrt(H)).

    Returns per-layer (w_ih (in,4H), w_hh (H,4H), b (4H,)) in f32, weights
    stored transposed (in_features, 4H), gate order i,f,g,o, biases pre-summed.
    """
    params = []
    bound = 1.0 / math.sqrt(hidd_dim)
    for layer in range(n_layers):
        in_dim = embb_dim if layer == 0 else hidd_dim
        key, k1, k2, k3, k4 = jax.random.split(key, 5)
        w_ih = jax.random.uniform(k1, (in_dim, 4 * hidd_dim), jnp.float32,
                                  minval=-bound, maxval=bound)
        w_hh = jax.random.uniform(k2, (hidd_dim, 4 * hidd_dim), jnp.float32,
                                  minval=-bound, maxval=bound)
        b_ih = jax.random.uniform(k3, (4 * hidd_dim,), jnp.float32,
                                  minval=-bound, maxval=bound)
        b_hh = jax.random.uniform(k4, (4 * hidd_dim,), jnp.float32,
                                  minval=-bound, maxval=bound)
        params.append((w_ih, w_hh, b_ih + b_hh))
    return params


def _pad_gate_cols(w, H, Hp):
    """Pad the 4H gate axis gate-by-gate: (..., 4H) -> (..., 4Hp)."""
    if Hp == H:
        return w
    lead = w.shape[:-1]
    w4 = w.reshape(lead + (4, H))
    w4 = jnp.pad(w4, [(0, 0)] * len(lead) + [(0, 0), (0, Hp - H)])
    return w4.reshape(lead + (4 * Hp,))


def pack_decoder_params(params, embb_dim, hidd_dim, param_dtype=jnp.bfloat16):
    """Stack per-layer params into lane-aligned (L, ...) arrays for the kernel."""
    E, H, L = embb_dim, hidd_dim, len(params)
    Hp = _round_up(H, 128)
    Ep = _round_up(E, 128)
    Dmax = max(Ep, Hp)

    wih_l, whh_l, b_l = [], [], []
    for layer, (w_ih, w_hh, b) in enumerate(params):
        in_dim = E if layer == 0 else H
        wih_p = _pad_gate_cols(w_ih, H, Hp)                  # (in_dim, 4Hp)
        wih_p = jnp.pad(wih_p, ((0, Dmax - in_dim), (0, 0))) # zero rows beyond in_dim
        whh_p = _pad_gate_cols(w_hh, H, Hp)                  # (H, 4Hp)
        whh_p = jnp.pad(whh_p, ((0, Hp - H), (0, 0)))
        b_p = _pad_gate_cols(b.reshape(1, 4 * H), H, Hp)     # (1, 4Hp)
        wih_l.append(wih_p.astype(param_dtype))
        whh_l.append(whh_p.astype(param_dtype))
        b_l.append(b_p.astype(jnp.float32))

    packed = dict(w_ih=jnp.stack(wih_l, 0),   # (L, Dmax, 4Hp) bf16
                  w_hh=jnp.stack(whh_l, 0),   # (L, Hp,  4Hp) bf16
                  b=jnp.stack(b_l, 0))        # (L, 1,   4Hp) f32
    dims = DecoderDims(E=E, H=H, Hp=Hp, Dmax=Dmax, L=L)
    return packed, dims


# ----------------------------------------------------------------------------
# Forward wrapper (Decoder.forward equivalent)
# ----------------------------------------------------------------------------
@partial(jax.jit, static_argnums=(1,))
def decoder_forward(packed, dims, inp, hidden, cell):
    """inp: (B, E); hidden/cell: (L, B, H). Returns (output, (hidden', cell'))."""
    E, H, Hp, Dmax, L = dims.E, dims.H, dims.Hp, dims.Dmax, dims.L
    B = inp.shape[0]
    if B <= 128:
        Bp, bt = _round_up(B, 8), _round_up(B, 8)
    else:
        Bp, bt = _round_up(B, 128), 128

    x0 = jnp.pad(inp.astype(jnp.float32), ((0, Bp - B), (0, Dmax - E)))
    h0 = jnp.pad(hidden.astype(jnp.float32),
                 ((0, 0), (0, Bp - B), (0, Hp - H)))
    c0 = jnp.pad(cell.astype(jnp.float32),
                 ((0, 0), (0, Bp - B), (0, Hp - H)))

    h_new, c_new = _decoder_pallas(x0, h0, c0,
                                   packed["w_ih"], packed["w_hh"], packed["b"],
                                   bt=bt)
    h_new = h_new[:, :B, :H]
    c_new = c_new[:, :B, :H]
    output = h_new[L - 1]
    return output, (h_new, c_new)


# ----------------------------------------------------------------------------
# Pure-JAX reference (same bf16 weight quantization as the kernel)
# ----------------------------------------------------------------------------
def _reference_forward(params, inp, hidden, cell):
    x = inp.astype(jnp.float32)
    new_h, new_c = [], []
    for layer, (w_ih, w_hh, b) in enumerate(params):
        h = hidden[layer].astype(jnp.float32)
        c = cell[layer].astype(jnp.float32)
        gates = (jnp.dot(x.astype(jnp.bfloat16), w_ih.astype(jnp.bfloat16),
                         preferred_element_type=jnp.float32)
                 + jnp.dot(h.astype(jnp.bfloat16), w_hh.astype(jnp.bfloat16),
                           preferred_element_type=jnp.float32)
                 + b.astype(jnp.float32))
        H = h.shape[1]
        i = jax.nn.sigmoid(gates[:, 0 * H:1 * H])
        f = jax.nn.sigmoid(gates[:, 1 * H:2 * H])
        g = jnp.tanh(gates[:, 2 * H:3 * H])
        o = jax.nn.sigmoid(gates[:, 3 * H:4 * H])
        c_n = f * c + i * g
        h_n = o * jnp.tanh(c_n)
        new_h.append(h_n)
        new_c.append(c_n)
        x = h_n
    return x, (jnp.stack(new_h, 0), jnp.stack(new_c, 0))


if __name__ == "__main__":
    # Lane-aligned small config: H and E multiples of 128, B multiple of 8.
    embb_dim, hidd_dim, n_layers, p = 128, 128, 2, 0.0
    batch = 8

    key = jax.random.PRNGKey(0)
    kp, kx, kh, kc = jax.random.split(key, 4)

    params = init_decoder_params(kp, embb_dim, hidd_dim, n_layers)
    packed, dims = pack_decoder_params(params, embb_dim, hidd_dim)

    inp = jax.random.normal(kx, (batch, embb_dim), jnp.float32)
    hidden = jax.random.normal(kh, (n_layers, batch, hidd_dim), jnp.float32)
    cell = jax.random.normal(kc, (n_layers, batch, hidd_dim), jnp.float32)

    out, (h_new, c_new) = decoder_forward(packed, dims, inp, hidden, cell)
    jax.block_until_ready((out, h_new, c_new))

    # Sanity check against pure-JAX reference (same bf16 weight rounding).
    ref_out, (ref_h, ref_c) = _reference_forward(params, inp, hidden, cell)
    assert out.shape == (batch, hidd_dim)
    assert h_new.shape == (n_layers, batch, hidd_dim)
    assert c_new.shape == (n_layers, batch, hidd_dim)
    assert jnp.allclose(out, ref_out, atol=2e-4, rtol=2e-4)
    assert jnp.allclose(h_new, ref_h, atol=2e-4, rtol=2e-4)
    assert jnp.allclose(c_new, ref_c, atol=2e-4, rtol=2e-4)

    print("KERNEL_OK")
</pallas_src>

<mosaic_0001>
module attributes {stable_mosaic.version = 11 : i64} {
  func.func @_decoder_lstm_kernel(%arg0: i32, %arg1: i32, %arg2: memref<8x128xf32, #tpu.memory_space<vmem>>, %arg3: memref<1x8x128xf32, #tpu.memory_space<vmem>>, %arg4: memref<1x8x128xf32, #tpu.memory_space<vmem>>, %arg5: memref<1x128x512xbf16, #tpu.memory_space<vmem>>, %arg6: memref<1x128x512xbf16, #tpu.memory_space<vmem>>, %arg7: memref<1x1x512xf32, #tpu.memory_space<vmem>>, %arg8: memref<1x8x128xf32, #tpu.memory_space<vmem>>, %arg9: memref<1x8x128xf32, #tpu.memory_space<vmem>>, %arg10: memref<8x128xf32, #tpu.memory_space<vmem>>) attributes {dimension_semantics = [#tpu.dimension_semantics<parallel>, #tpu.dimension_semantics<arbitrary>], iteration_bounds = array<i64: 1, 2>, scalar_prefetch = 0 : i64, scratch_operands = 1 : i64, tpu.core_type = #tpu.core_type<tc>, window_params = [{transform_indices = @transform_0, window_bounds = array<i64: 8, 128>}, {transform_indices = @transform_1, window_bounds = array<i64: 1, 8, 128>}, {transform_indices = @transform_2, window_bounds = array<i64: 1, 8, 128>}, {transform_indices = @transform_3, window_bounds = array<i64: 1, 128, 512>}, {transform_indices = @transform_4, window_bounds = array<i64: 1, 128, 512>}, {transform_indices = @transform_5, window_bounds = array<i64: 1, 1, 512>}, {transform_indices = @transform_6, window_bounds = array<i64: 1, 8, 128>}, {transform_indices = @transform_7, window_bounds = array<i64: 1, 8, 128>}]} {
    %c0_i32 = arith.constant 0 : i32
    %0 = arith.cmpi eq, %arg1, %c0_i32 : i32
    %1 = arith.extui %0 : i1 to i32
    %c0_i32_0 = arith.constant 0 : i32
    %2 = arith.cmpi ne, %1, %c0_i32_0 : i32
    scf.if %2 {
      %c0_29 = arith.constant 0 : index
      %c0_30 = arith.constant 0 : index
      %53 = vector.load %arg2[%c0_29, %c0_30] : memref<8x128xf32, #tpu.memory_space<vmem>>, vector<8x128xf32>
      %c0_31 = arith.constant 0 : index
      %c0_32 = arith.constant 0 : index
      %54 = vector.load %arg10[%c0_31, %c0_32] : memref<8x128xf32, #tpu.memory_space<vmem>>, vector<8x128xf32>
      tpu.vector_store %arg10[%c0_31, %c0_32], %53 {strides = array<i32>} : memref<8x128xf32, #tpu.memory_space<vmem>>, vector<8x128xf32>,
    } else {
    }
    %c0 = arith.constant 0 : index
    %c0_1 = arith.constant 0 : index
    %3 = vector.load %arg10[%c0, %c0_1] : memref<8x128xf32, #tpu.memory_space<vmem>>, vector<8x128xf32>
    %4 = arith.truncf %3 : vector<8x128xf32> to vector<8x128xbf16>
    %c0_2 = arith.constant 0 : index
    %c0_3 = arith.constant 0 : index
    %c0_4 = arith.constant 0 : index
    %5 = vector.load %arg3[%c0_2, %c0_3, %c0_4] : memref<1x8x128xf32, #tpu.memory_space<vmem>>, vector<1x8x128xf32>
    %6 = vector.shape_cast %5 : vector<1x8x128xf32> to vector<8x128xf32>
    %7 = arith.truncf %6 : vector<8x128xf32> to vector<8x128xbf16>
    %c0_5 = arith.constant 0 : index
    %c0_6 = arith.constant 0 : index
    %c0_7 = arith.constant 0 : index
    %8 = vector.load %arg4[%c0_5, %c0_6, %c0_7] : memref<1x8x128xf32, #tpu.memory_space<vmem>>, vector<1x8x128xf32>
    %9 = vector.shape_cast %8 : vector<1x8x128xf32> to vector<8x128xf32>
    %c0_8 = arith.constant 0 : index
    %c0_9 = arith.constant 0 : index
    %c0_10 = arith.constant 0 : index
    %10 = vector.load %arg5[%c0_8, %c0_9, %c0_10] : memref<1x128x512xbf16, #tpu.memory_space<vmem>>, vector<1x128x512xbf16>
    %11 = vector.shape_cast %10 : vector<1x128x512xbf16> to vector<128x512xbf16>
    %cst = arith.constant dense<0.000000e+00> : vector<8x512xf32>
    %12 = tpu.matmul %4, %11, %cst {dimension_numbers = #tpu.dot_dimension_numbers<[1], [0], [0], [1], [0, 0, 1, 1], [], []>} : vector<8x128xbf16>, vector<128x512xbf16>, vector<8x512xf32> -> vector<8x512xf32>
    %c0_11 = arith.constant 0 : index
    %c0_12 = arith.constant 0 : index
    %c0_13 = arith.constant 0 : index
    %13 = vector.load %arg6[%c0_11, %c0_12, %c0_13] : memref<1x128x512xbf16, #tpu.memory_space<vmem>>, vector<1x128x512xbf16>
    %14 = vector.shape_cast %13 : vector<1x128x512xbf16> to vector<128x512xbf16>
    %cst_14 = arith.constant dense<0.000000e+00> : vector<8x512xf32>
    %15 = tpu.matmul %7, %14, %cst_14 {dimension_numbers = #tpu.dot_dimension_numbers<[1], [0], [0], [1], [0, 0, 1, 1], [], []>} : vector<8x128xbf16>, vector<128x512xbf16>, vector<8x512xf32> -> vector<8x512xf32>
    %16 = arith.addf %12, %15 : vector<8x512xf32>
    %c0_15 = arith.constant 0 : index
    %c0_16 = arith.constant 0 : index
    %c0_17 = arith.constant 0 : index
    %17 = vector.load %arg7[%c0_15, %c0_16, %c0_17] : memref<1x1x512xf32, #tpu.memory_space<vmem>>, vector<1x1x512xf32>
    %18 = vector.shape_cast %17 : vector<1x1x512xf32> to vector<1x512xf32>
    %19 = vector.broadcast %18 : vector<1x512xf32> to vector<8x512xf32>
    %20 = arith.addf %16, %19 : vector<8x512xf32>
    %21 = vector.extract_strided_slice %20 {offsets = [0, 0], sizes = [8, 128], strides = [1, 1]} : vector<8x512xf32> to vector<8x128xf32>
    %22 = arith.negf %21 : vector<8x128xf32>
    %23 = math.exp %22 : vector<8x128xf32>
    %cst_18 = arith.constant 1.000000e+00 : f32
    %24 = vector.broadcast %cst_18 : f32 to vector<8x128xf32>
    %25 = arith.addf %24, %23 : vector<8x128xf32>
    %26 = arith.divf %24, %25 : vector<8x128xf32>
    %27 = vector.extract_strided_slice %20 {offsets = [0, 128], sizes = [8, 128], strides = [1, 1]} : vector<8x512xf32> to vector<8x128xf32>
    %28 = arith.negf %27 : vector<8x128xf32>
    %29 = math.exp %28 : vector<8x128xf32>
    %cst_19 = arith.constant 1.000000e+00 : f32
    %30 = vector.broadcast %cst_19 : f32 to vector<8x128xf32>
    %31 = arith.addf %30, %29 : vector<8x128xf32>
    %32 = arith.divf %30, %31 : vector<8x128xf32>
    %33 = vector.extract_strided_slice %20 {offsets = [0, 256], sizes = [8, 128], strides = [1, 1]} : vector<8x512xf32> to vector<8x128xf32>
    %34 = math.tanh %33 : vector<8x128xf32>
    %35 = vector.extract_strided_slice %20 {offsets = [0, 384], sizes = [8, 128], strides = [1, 1]} : vector<8x512xf32> to vector<8x128xf32>
    %36 = arith.negf %35 : vector<8x128xf32>
    %37 = math.exp %36 : vector<8x128xf32>
    %cst_20 = arith.constant 1.000000e+00 : f32
    %38 = vector.broadcast %cst_20 : f32 to vector<8x128xf32>
    %39 = arith.addf %38, %37 : vector<8x128xf32>
    %40 = arith.divf %38, %39 : vector<8x128xf32>
    %41 = arith.mulf %32, %9 : vector<8x128xf32>
    %42 = arith.mulf %26, %34 : vector<8x128xf32>
    %43 = arith.addf %41, %42 : vector<8x128xf32>
    %44 = math.tanh %43 : vector<8x128xf32>
    %45 = arith.mulf %40, %44 : vector<8x128xf32>
    %c0_21 = arith.constant 0 : index
    %c0_22 = arith.constant 0 : index
    %c0_23 = arith.constant 0 : index
    %46 = vector.load %arg8[%c0_21, %c0_22, %c0_23] : memref<1x8x128xf32, #tpu.memory_space<vmem>>, vector<1x8x128xf32>
    %47 = vector.shape_cast %46 : vector<1x8x128xf32> to vector<8x128xf32>
    %48 = vector.shape_cast %45 : vector<8x128xf32> to vector<1x8x128xf32>
    tpu.vector_store %arg8[%c0_21, %c0_22, %c0_23], %48 {strides = array<i32>} : memref<1x8x128xf32, #tpu.memory_space<vmem>>, vector<1x8x128xf32>,
    %c0_24 = arith.constant 0 : index
    %c0_25 = arith.constant 0 : index
    %c0_26 = arith.constant 0 : index
    %49 = vector.load %arg9[%c0_24, %c0_25, %c0_26] : memref<1x8x128xf32, #tpu.memory_space<vmem>>, vector<1x8x128xf32>
    %50 = vector.shape_cast %49 : vector<1x8x128xf32> to vector<8x128xf32>
    %51 = vector.shape_cast %43 : vector<8x128xf32> to vector<1x8x128xf32>
    tpu.vector_store %arg9[%c0_24, %c0_25, %c0_26], %51 {strides = array<i32>} : memref<1x8x128xf32, #tpu.memory_space<vmem>>, vector<1x8x128xf32>,
    %c0_27 = arith.constant 0 : index
    %c0_28 = arith.constant 0 : index
    %52 = vector.load %arg10[%c0_27, %c0_28] : memref<8x128xf32, #tpu.memory_space<vmem>>, vector<8x128xf32>
    tpu.vector_store %arg10[%c0_27, %c0_28], %45 {strides = array<i32>} : memref<8x128xf32, #tpu.memory_space<vmem>>, vector<8x128xf32>,
    return
  }
  func.func @transform_0(%arg0: i32, %arg1: i32) -> (i32, i32) {
    %c0_i32 = arith.constant 0 : i32
    %c0_i32_0 = arith.constant 0 : i32
    return %arg0, %c0_i32 : i32, i32
  }
  func.func @transform_1(%arg0: i32, %arg1: i32) -> (i32, i32, i32) {
    %c0_i32 = arith.constant 0 : i32
    %c0_i32_0 = arith.constant 0 : i32
    return %arg1, %arg0, %c0_i32 : i32, i32, i32
  }
  func.func @transform_2(%arg0: i32, %arg1: i32) -> (i32, i32, i32) {
    %c0_i32 = arith.constant 0 : i32
    %c0_i32_0 = arith.constant 0 : i32
    return %arg1, %arg0, %c0_i32 : i32, i32, i32
  }
  func.func @transform_3(%arg0: i32, %arg1: i32) -> (i32, i32, i32) {
    %c0_i32 = arith.constant 0 : i32
    %c0_i32_0 = arith.constant 0 : i32
    %c0_i32_1 = arith.constant 0 : i32
    return %arg1, %c0_i32, %c0_i32_0 : i32, i32, i32
  }
  func.func @transform_4(%arg0: i32, %arg1: i32) -> (i32, i32, i32) {
    %c0_i32 = arith.constant 0 : i32
    %c0_i32_0 = arith.constant 0 : i32
    %c0_i32_1 = arith.constant 0 : i32
    return %arg1, %c0_i32, %c0_i32_0 : i32, i32, i32
  }
  func.func @transform_5(%arg0: i32, %arg1: i32) -> (i32, i32, i32) {
    %c0_i32 = arith.constant 0 : i32
    %c0_i32_0 = arith.constant 0 : i32
    %c0_i32_1 = arith.constant 0 : i32
    return %arg1, %c0_i32, %c0_i32_0 : i32, i32, i32
  }
  func.func @transform_6(%arg0: i32, %arg1: i32) -> (i32, i32, i32) {
    %c0_i32 = arith.constant 0 : i32
    %c0_i32_0 = arith.constant 0 : i32
    return %arg1, %arg0, %c0_i32 : i32, i32, i32
  }
  func.func @transform_7(%arg0: i32, %arg1: i32) -> (i32, i32, i32) {
    %c0_i32 = arith.constant 0 : i32
    %c0_i32_0 = arith.constant 0 : i32
    return %arg1, %arg0, %c0_i32 : i32, i32, i32
  }
}

</mosaic_0001>

<bundles_post_ra>
// kernel: decoder_forward.1
= control target key start
LH: loop header
LB: loop body
LE: loop exit
PB: predicated region body
PF: predicated region fallthrough
CT: control target
= control target key end

     0   :  { %s2121_s0 = inlined_call_operand.vmem [shape: f32[8,128], index: 0, kind: input, shape index: {}]   ;;  %s2122_s1 = inlined_call_operand.vmem [shape: f32[2,8,128], index: 1, kind: input, shape index: {}, may-alias: {1,6}]   ;;  %s2123_s2 = inlined_call_operand.vmem [shape: f32[2,8,128], index: 2, kind: input, shape index: {}, may-alias: {2,7}]   ;;  %s2124_s3 = inlined_call_operand.hbm [shape: bf16[2,128,512], index: 3, kind: input, shape index: {}]   ;;  %s2125_s4 = inlined_call_operand.hbm [shape: bf16[2,128,512], index: 4, kind: input, shape index: {}]   ;;  %s2126_s5 = inlined_call_operand.vmem [shape: f32[2,1,512], index: 5, kind: input, shape index: {}]   ;;  %s2127_s6 = inlined_call_operand.vmem [shape: f32[2,8,128], index: 6, kind: output, shape index: {0}, may-alias: {1,6}]   ;;  %s2128_s7 = inlined_call_operand.vmem [shape: f32[2,8,128], index: 7, kind: output, shape index: {1}, may-alias: {2,7}]  }
   0x1   :  { %2131 = sst [smem:[#allocation12_spill]] %s2124_s3 }
   0x2   :  { %13 = vsyncpa [#allocation4], 0 }
   0x3   :  { %15 = vsyncpa [#allocation4 + $0x1], 0 }
   0x4   :  { %16 = vsyncpa [#allocation6], 0 }
   0x5   :  { %18 = vsyncpa [#allocation6 + $0x1], 0  ;;  %s1836_s24 = smov 0   ;;  %s1838_s25 = smov 0  }
   0x6   :  { %s1840_s26 = smov 0   ;;  %s1842_s27 = smov 0  }
   0x7   :  { %s1844_s28 = smov 0   ;;  %s1846_s29 = smov 0  }
   0x8 LB: > { %2132 = sst [smem:[#allocation9_spill]] %s1788_s28  ;;  %s1253_s30 = sadd.s32 4294967295, %s1792_s29   ;;  %s1792_s29 = sphi %s1846_s29, %s24_s29   ;;  %s1788_s28 = sphi %s1844_s28, %s2141_s28   ;;  %s1784_s27 = sphi %s1842_s27, %s2140_s27   ;;  %s1780_s26 = sphi %s1840_s26, %s2144_s26   ;;  %s1776_s25 = sphi %s1838_s25, %s2143_s25   ;;  %s1772_s24 = sphi %s1836_s24, %s2142_s24  }
   0x9   : > { %s33_s8 = sadd.s32 1, %s1788_s28  ;;  %s125_s9 = sadd.s32 1, %s1780_s26 }
   0xa   : > { %p34_p0 = scmp.ge.s32.totalorder %s33_s8, 2  ;;  %p132_p1 = scmp.ne.s32.totalorder %s1780_s26, %s1776_s25 }
   0xb   : > { %p133_p2 = scmp.eq.s32.totalorder %s1792_s29, 0  ;;  %p138_p4 = scmp.ne.s32.totalorder %s1776_s25, %s1772_s24 }
   0xc   : > { %s2146_s8 = smov (%p34_p0, %s33_s8), 0  ;;  %p139_p5 = scmp.eq.s32.totalorder %s1253_s30, 0 }
   0xd   : > { %2133 = sst [smem:[#allocation10_spill]] %s2146_s8  ;;  %p1872_p3 = por %p133_p2, %p132_p1 }
   0xe   : > { %s122_s11 = ssub.s32 %s1788_s28, %s2146_s8  ;;  %p1879_p7 = por %p139_p5, %p138_p4 }
   0xf   : > { %p123_p6 = scmp.eq.s32.totalorder %s122_s11, 0  ;;  %p1611_p8 = scmp.lt.s32.totalorder %s1792_s29, 2 }
  0x10   : > { %s1888_s14 = sand.u32 1, %s1780_s26   ;;  %s1534_s15 = sshll.u32 %s1788_s28, 8 }
  0x11   : > { %s1885_s13 = scalar_select %p123_p6, %s1780_s26, %s125_s9  }
  0x12   : > { %s1258_s16 = sshll.u32 %s1888_s14, 8  ;;  %s2137_s3 = sld [smem:[#allocation12_spill]] }
  0x13   : > { %2136 = sst [smem:[#allocation11_spill]] %s1885_s13  ;;  %s301_s21 = scalar_lea.vmem [#allocation3], %s1258_s16 }
  0x14   : > { %s309_s22 = sshll.u32 %s301_s21, 4  ;;  %p1897_p9 = pnand %p1611_p8, %p1872_p3  ;;  %s310_s22 = int_to_ptr.vmem [resolvable:$true] %s309_s22 }
  0x15   : > { %p1264_p10 = scmp.ge.s32.totalorder %s1792_s29, 1  ;;  %p346_p11 = scmp.lt.s32.totalorder %s1792_s29, 3 }
  0x16   : > { %s298_s24 = scalar_lea.sflag [#allocation4], %s1888_s14  ;;  %s1794_s30 = smov 256  }
  0x17   : > { %s1795_s9 = smov 16   ;;  %p347_p12 = pnand %p1264_p10, %p346_p11 }
  0x18   : > { %s306_s19 = scalar_lea.hbm %s2137_s3, %s1534_s15  ;;  %s328_s18 = scalar_lea.hbm %s2125_s4, %s1534_s15 }
  0x19   : > { %s307_s20 = sshll.u32 %s306_s19, 4  ;;  %s329_s19 = sshll.u32 %s328_s18, 4  ;;  %s308_s20 = int_to_ptr.hbm [resolvable:$true] %s307_s20  ;;  %s330_s19 = int_to_ptr.hbm [resolvable:$true] %s329_s19 }
  0x1a   : > { %1607 = dma.hbm_to_vmem [thread:$0]  (!%p1897_p9), %s308_s20, 4096, %s310_s22, %s298_s24, %s1794_s30, %s1794_s30, %s1795_s9  }
  0x1b   : > { %s323_s10 = scalar_lea.vmem [#allocation5], %s1258_s16  ;;  %s320_s3 = scalar_lea.sflag [#allocation6], %s1888_s14 }
  0x1c   : > { %s331_s21 = sshll.u32 %s323_s10, 4  ;;  %350 = sbr.rel (%p347_p12) target bundleno = 286 (0x11e), region = 44  ;;  %s332_s21 = int_to_ptr.vmem [resolvable:$true] %s331_s21 }
  0x1d   : > { %1610 = dma.hbm_to_vmem [thread:$0]  (!%p1897_p9), %s330_s19, 4096, %s332_s21, %s320_s3, %s1794_s30, %s1794_s30, %s1795_s9  }
  0x1e   : > { %s352_s8 = sand.u32 (!%p347_p12), 1, %s1776_s25  }
  0x1f   : > { %s1265_s28 = sshll.u32 (!%p347_p12), %s352_s8, 8  ;;  %s353_s13 = scalar_lea.sflag (!%p347_p12), [#allocation4], %s352_s8 }
  0x20   : > { %s1913_s20 = scalar_lea.vmem (!%p347_p12), [#allocation3], %s1265_s28 }
  0x21   : > { %1763 = dma.done.wait (%p1879_p7), %s353_s13, 4096  }
  0x22   : > { %1765 = vsyncadd (%p1879_p7), %s353_s13, 4294963200  ;;  %s363_s15 = scalar_lea.sflag [#allocation6], %s352_s8  ;;  %s1919_s16 = scalar_lea.vmem [#allocation5], %s1265_s28 }
  0x23   : > { %1767 = dma.done.wait (%p1879_p7), %s363_s15, 4096  }
  0x24   : > { %1769 = vsyncadd (%p1879_p7), %s363_s15, 4294963200  ;;  %p438_p13 = scmp.lt.s32.totalorder %s1784_s27, 1  ;;  %p1272_p0 = scmp.ne.s32.totalorder %s1784_s27, 0 }
  0x26   : > { %s439_s3 = scalar_select %p438_p13, %s1784_s27, 1 }
  0x27   : > { %473 = sbr.rel (%p1272_p0) target bundleno = 46 (0x2e), region = 56 }
  0x28   : > { %s1927_s14 = sshll.u32 %s439_s3, 3  ;;  %s1269_s13 = sshll.u32 %s439_s3, 2 }
  0x29   : > { %s444_s28 = scalar_lea.vmem %s2122_s1, %s1927_s14  ;;  %s451_s12 = scalar_lea.vmem %s2123_s2, %s1927_s14 }
  0x2a   : > { %s1940_s11 = scalar_lea.vmem %s2126_s5, %s1269_s13  ;;  %s462_s19 = scalar_lea.vmem %s2127_s6, %s1927_s14 }
  0x2b   : > { %s469_s15 = scalar_lea.vmem %s2128_s7, %s1927_s14 }
  0x2c   : > { %v474_v0 = vld [vmem:[%s2121_s0] sm:$0xff] }
  0x2d   : > { %475 = vst [vmem:[#allocation2] sm:$0xff] %v474_v0 }
  0x2e PF: > { %v1387_v1 = vld [vmem:[%s1919_s16 + $0xe0] sm:$0xf]  ;;  %v1598_v2 = vld [vmem:[%s1919_s16 + $0xec] sm:$0xf0]  ;;  %v1596_v3 = vld [vmem:[%s1919_s16 + $0xe4] sm:$0xf] }
  0x2f   : > { %v1388_v4 = vor.u32 %v1598_v2, %v1387_v1  ;;  %v1389_v5 = vld [vmem:[%s1919_s16 + $0xf0] sm:$0xf0]  ;;  %v1395_v6 = vld [vmem:[%s1919_s16 + $0xe8] sm:$0xf]  ;;  %v1599_v7 = vld [vmem:[%s1919_s16 + $0xf4] sm:$0xf0] }
  0x30   : > { %v1392_v8 = vor.u32 %v1596_v3, %v1389_v5  ;;  %v1396_v9 = vor.u32 %v1599_v7, %v1395_v6  ;;  %v1597_v10 = vld [vmem:[%s1919_s16 + $0xec] sm:$0xf]  ;;  %v1397_v11 = vld [vmem:[%s1919_s16 + $0xf8] sm:$0xf0]  ;;  %v1371_v12 = vld [vmem:[%s1919_s16 + $0xc0] sm:$0xf] }
  0x31   : > { %705 = vmatpush.bf16.msra.mxu0 %v1388_v4  ;;  %v1400_v13 = vor.u32 %v1597_v10, %v1397_v11  ;;  %v1594_v14 = vld [vmem:[%s1919_s16 + $0xcc] sm:$0xf0]  ;;  %v1592_v15 = vld [vmem:[%s1919_s16 + $0xc4] sm:$0xf]  ;;  %v1373_v16 = vld [vmem:[%s1919_s16 + $0xd0] sm:$0xf0] }
  0x32   : > { %718 = vmatpush.bf16.msra.mxu1 %v1392_v8  ;;  %731 = vmatpush.bf16.msra.mxu2 %v1396_v9  ;;  %v1372_v17 = vor.u32 %v1594_v14, %v1371_v12  ;;  %v1376_v18 = vor.u32 %v1592_v15, %v1373_v16  ;;  %v1379_v19 = vld [vmem:[%s1919_s16 + $0xc8] sm:$0xf]  ;;  %v1595_v20 = vld [vmem:[%s1919_s16 + $0xd4] sm:$0xf0]  ;;  %v1593_v21 = vld [vmem:[%s1919_s16 + $0xcc] sm:$0xf] }
  0x33   : > { %744 = vmatpush.bf16.msra.mxu3 %v1400_v13  ;;  %v1380_v22 = vor.u32 %v1595_v20, %v1379_v19  ;;  %v1381_v23 = vld [vmem:[%s1919_s16 + $0xd8] sm:$0xf0]  ;;  %v1355_v24 = vld [vmem:[%s1919_s16 + $0xa0] sm:$0xf]  ;;  %v1590_v25 = vld [vmem:[%s1919_s16 + $0xac] sm:$0xf0] }
  0x34   : > { %v1384_v26 = vor.u32 %v1593_v21, %v1381_v23  ;;  %v1588_v27 = vld [vmem:[%s1919_s16 + $0xa4] sm:$0xf]  ;;  %v1357_v28 = vld [vmem:[%s1919_s16 + $0xb0] sm:$0xf0]  ;;  %v1363_v29 = vld [vmem:[%s1919_s16 + $0xa8] sm:$0xf]  ;;  %v1356_v30 = vor.u32 %v1590_v25, %v1355_v24 }
  0x35   : > { %706 = vmatpush.bf16.msra.mxu0 %v1372_v17  ;;  %v1591_v31 = vld [vmem:[%s1919_s16 + $0xb4] sm:$0xf0]  ;;  %v1589_v32 = vld [vmem:[%s1919_s16 + $0xac] sm:$0xf]  ;;  %v1365_v33 = vld [vmem:[%s1919_s16 + $0xb8] sm:$0xf0]  ;;  %v1360_v34 = vor.u32 %v1588_v27, %v1357_v28 }
  0x36   : > { %719 = vmatpush.bf16.msra.mxu1 %v1376_v18  ;;  %732 = vmatpush.bf16.msra.mxu2 %v1380_v22  ;;  %v1364_v35 = vor.u32 %v1591_v31, %v1363_v29  ;;  %v1339_v36 = vld [vmem:[%s1919_s16 + $0x80] sm:$0xf]  ;;  %v1586_v37 = vld [vmem:[%s1919_s16 + $0x8c] sm:$0xf0]  ;;  %v1584_v38 = vld [vmem:[%s1919_s16 + $0x84] sm:$0xf]  ;;  %v1368_v39 = vor.u32 %v1589_v32, %v1365_v33 }
  0x37   : > { %745 = vmatpush.bf16.msra.mxu3 %v1384_v26  ;;  %v1341_v40 = vld [vmem:[%s1919_s16 + $0x90] sm:$0xf0]  ;;  %v1347_v41 = vld [vmem:[%s1919_s16 + $0x88] sm:$0xf]  ;;  %v1587_v42 = vld [vmem:[%s1919_s16 + $0x94] sm:$0xf0]  ;;  %v1340_v45 = vor.u32 %v1586_v37, %v1339_v36 }
  0x38   : > { %v1585_v43 = vld [vmem:[%s1919_s16 + $0x8c] sm:$0xf]  ;;  %v1349_v44 = vld [vmem:[%s1919_s16 + $0x98] sm:$0xf0]  ;;  %v1344_v46 = vor.u32 %v1584_v38, %v1341_v40  ;;  %v1348_v47 = vor.u32 %v1587_v42, %v1347_v41  ;;  %v1323_v48 = vld [vmem:[%s1919_s16 + $0x60] sm:$0xf] }
  0x39   : > { %707 = vmatpush.bf16.msra.mxu0 %v1356_v30  ;;  %v1582_v49 = vld [vmem:[%s1919_s16 + $0x6c] sm:$0xf0]  ;;  %v1580_v50 = vld [vmem:[%s1919_s16 + $0x64] sm:$0xf]  ;;  %v1352_v51 = vor.u32 %v1585_v43, %v1349_v44  ;;  %v1325_v52 = vld [vmem:[%s1919_s16 + $0x70] sm:$0xf0] }
  0x3a   : > { %720 = vmatpush.bf16.msra.mxu1 %v1360_v34  ;;  %733 = vmatpush.bf16.msra.mxu2 %v1364_v35  ;;  %v1331_v53 = vld [vmem:[%s1919_s16 + $0x68] sm:$0xf]  ;;  %v1583_v54 = vld [vmem:[%s1919_s16 + $0x74] sm:$0xf0]  ;;  %v1581_v55 = vld [vmem:[%s1919_s16 + $0x6c] sm:$0xf]  ;;  %v1324_v57 = vor.u32 %v1582_v49, %v1323_v48  ;;  %v1328_v58 = vor.u32 %v1580_v50, %v1325_v52 }
  0x3b   : > { %746 = vmatpush.bf16.msra.mxu3 %v1368_v39  ;;  %v1333_v56 = vld [vmem:[%s1919_s16 + $0x78] sm:$0xf0]  ;;  %v1332_v59 = vor.u32 %v1583_v54, %v1331_v53  ;;  %v1307_v60 = vld [vmem:[%s1919_s16 + $0x40] sm:$0xf]  ;;  %v1578_v61 = vld [vmem:[%s1919_s16 + $0x4c] sm:$0xf0] }
  0x3c   : > { %v1576_v62 = vld [vmem:[%s1919_s16 + $0x44] sm:$0xf]  ;;  %v1336_v63 = vor.u32 %v1581_v55, %v1333_v56  ;;  %v1309_v0 = vld [vmem:[%s1919_s16 + $0x50] sm:$0xf0]  ;;  %v1315_v1 = vld [vmem:[%s1919_s16 + $0x48] sm:$0xf]  ;;  %v1308_v5 = vor.u32 %v1578_v61, %v1307_v60 }
  0x3d   : > { %708 = vmatpush.bf16.msra.mxu0 %v1340_v45  ;;  %v1579_v2 = vld [vmem:[%s1919_s16 + $0x54] sm:$0xf0]  ;;  %v1577_v3 = vld [vmem:[%s1919_s16 + $0x4c] sm:$0xf]  ;;  %v1317_v4 = vld [vmem:[%s1919_s16 + $0x58] sm:$0xf0]  ;;  %v1312_v6 = vor.u32 %v1576_v62, %v1309_v0 }
  0x3e   : > { %721 = vmatpush.bf16.msra.mxu1 %v1344_v46  ;;  %734 = vmatpush.bf16.msra.mxu2 %v1348_v47  ;;  %v1316_v7 = vor.u32 %v1579_v2, %v1315_v1  ;;  %v1291_v8 = vld [vmem:[%s1919_s16 + $0x20] sm:$0xf]  ;;  %v1574_v9 = vld [vmem:[%s1919_s16 + $0x2c] sm:$0xf0]  ;;  %v1572_v10 = vld [vmem:[%s1919_s16 + $0x24] sm:$0xf]  ;;  %v1320_v11 = vor.u32 %v1577_v3, %v1317_v4 }
  0x3f   : > { %747 = vmatpush.bf16.msra.mxu3 %v1352_v51  ;;  %v1293_v12 = vld [vmem:[%s1919_s16 + $0x30] sm:$0xf0]  ;;  %v1299_v13 = vld [vmem:[%s1919_s16 + $0x28] sm:$0xf]  ;;  %v1575_v14 = vld [vmem:[%s1919_s16 + $0x34] sm:$0xf0]  ;;  %v1292_v17 = vor.u32 %v1574_v9, %v1291_v8 }
  0x40   : > { %v1573_v15 = vld [vmem:[%s1919_s16 + $0x2c] sm:$0xf]  ;;  %v1301_v16 = vld [vmem:[%s1919_s16 + $0x38] sm:$0xf0]  ;;  %v1275_v18 = vld [vmem:[%s1919_s16] sm:$0xf]  ;;  %v1296_v20 = vor.u32 %v1572_v10, %v1293_v12  ;;  %v1300_v21 = vor.u32 %v1575_v14, %v1299_v13 }
  0x41   : > { %709 = vmatpush.bf16.msra.mxu0 %v1324_v57  ;;  %v1570_v19 = vld [vmem:[%s1919_s16 + $0xc] sm:$0xf0]  ;;  %v1568_v22 = vld [vmem:[%s1919_s16 + $0x4] sm:$0xf]  ;;  %v1277_v23 = vld [vmem:[%s1919_s16 + $0x10] sm:$0xf0]  ;;  %v1304_v25 = vor.u32 %v1573_v15, %v1301_v16 }
  0x42   : > { %722 = vmatpush.bf16.msra.mxu1 %v1328_v58  ;;  %735 = vmatpush.bf16.msra.mxu2 %v1332_v59  ;;  %v1283_v24 = vld [vmem:[%s1919_s16 + $0x8] sm:$0xf]  ;;  %v1571_v26 = vld [vmem:[%s1919_s16 + $0x14] sm:$0xf0]  ;;  %v1569_v27 = vld [vmem:[%s1919_s16 + $0xc] sm:$0xf]  ;;  %v1276_v32 = vor.u32 %v1570_v19, %v1275_v18  ;;  %v1280_v36 = vor.u32 %v1568_v22, %v1277_v23 }
  0x43   : > { %748 = vmatpush.bf16.msra.mxu3 %v1336_v63  ;;  %v1285_v28 = vld [vmem:[%s1919_s16 + $0x18] sm:$0xf0]  ;;  %v1515_v29 = vld [vmem:[%s1913_s20 + $0xe0] sm:$0xf]  ;;  %v1566_v30 = vld [vmem:[%s1913_s20 + $0xec] sm:$0xf0]  ;;  %v1284_v37 = vor.u32 %v1571_v26, %v1283_v24 }
  0x44   : > { %v1564_v31 = vld [vmem:[%s1913_s20 + $0xe4] sm:$0xf]  ;;  %v1517_v33 = vld [vmem:[%s1913_s20 + $0xf0] sm:$0xf0]  ;;  %v1523_v34 = vld [vmem:[%s1913_s20 + $0xe8] sm:$0xf]  ;;  %v1288_v41 = vor.u32 %v1569_v27, %v1285_v28  ;;  %v1516_v42 = vor.u32 %v1566_v30, %v1515_v29 }
  0x45   : > { %710 = vmatpush.bf16.msra.mxu0 %v1308_v5  ;;  %v1567_v35 = vld [vmem:[%s1913_s20 + $0xf4] sm:$0xf0]  ;;  %v1565_v38 = vld [vmem:[%s1913_s20 + $0xec] sm:$0xf]  ;;  %v1525_v39 = vld [vmem:[%s1913_s20 + $0xf8] sm:$0xf0]  ;;  %v1520_v43 = vor.u32 %v1564_v31, %v1517_v33 }
  0x46   : > { %723 = vmatpush.bf16.msra.mxu1 %v1312_v6  ;;  %736 = vmatpush.bf16.msra.mxu2 %v1316_v7  ;;  %v478_v40 = vld [vmem:[%s444_s28] sm:$0xff]  ;;  %v1524_v44 = vor.u32 %v1567_v35, %v1523_v34  ;;  %v1499_v45 = vld [vmem:[%s1913_s20 + $0xc0] sm:$0xf]  ;;  %v1562_v46 = vld [vmem:[%s1913_s20 + $0xcc] sm:$0xf0]  ;;  %v1528_v48 = vor.u32 %v1565_v38, %v1525_v39 }
  0x47   : > { %749 = vmatpush.bf16.msra.mxu3 %v1320_v11  ;;  %v1560_v47 = vld [vmem:[%s1913_s20 + $0xc4] sm:$0xf]  ;;  %v1501_v49 = vld [vmem:[%s1913_s20 + $0xd0] sm:$0xf0]  ;;  %v1507_v50 = vld [vmem:[%s1913_s20 + $0xc8] sm:$0xf]  ;;  %v479_v52 = vpack.c.bf16 %v478_v40, %v478_v40  ;;  %v1500_v55 = vor.u32 %v1562_v46, %v1499_v45 }
  0x48   : > { %v1563_v51 = vld [vmem:[%s1913_s20 + $0xd4] sm:$0xf0]  ;;  %v1561_v53 = vld [vmem:[%s1913_s20 + $0xcc] sm:$0xf]  ;;  %v1509_v54 = vld [vmem:[%s1913_s20 + $0xd8] sm:$0xf0]  ;;  %v1504_v56 = vor.u32 %v1560_v47, %v1501_v49 }
  0x49   : > { %711 = vmatpush.bf16.msra.mxu0 %v1292_v17  ;;  %v1508_v57 = vor.u32 %v1563_v51, %v1507_v50  ;;  %v1483_v58 = vld [vmem:[%s1913_s20 + $0xa0] sm:$0xf]  ;;  %v1558_v59 = vld [vmem:[%s1913_s20 + $0xac] sm:$0xf0]  ;;  %v1556_v60 = vld [vmem:[%s1913_s20 + $0xa4] sm:$0xf]  ;;  %v1512_v61 = vor.u32 %v1561_v53, %v1509_v54 }
  0x4a   : > { %724 = vmatpush.bf16.msra.mxu1 %v1296_v20  ;;  %737 = vmatpush.bf16.msra.mxu2 %v1300_v21  ;;  %v1485_v62 = vld [vmem:[%s1913_s20 + $0xb0] sm:$0xf0]  ;;  %v1491_v63 = vld [vmem:[%s1913_s20 + $0xa8] sm:$0xf]  ;;  %v1559_v0 = vld [vmem:[%s1913_s20 + $0xb4] sm:$0xf0]  ;;  %v1484_v3 = vor.u32 %v1558_v59, %v1483_v58 }
  0x4b   : > { %750 = vmatpush.bf16.msra.mxu3 %v1304_v25  ;;  %v1557_v1 = vld [vmem:[%s1913_s20 + $0xac] sm:$0xf]  ;;  %v1493_v2 = vld [vmem:[%s1913_s20 + $0xb8] sm:$0xf0]  ;;  %v1488_v4 = vor.u32 %v1556_v60, %v1485_v62  ;;  %v1492_v5 = vor.u32 %v1559_v0, %v1491_v63  ;;  %v1467_v6 = vld [vmem:[%s1913_s20 + $0x80] sm:$0xf] }
  0x4c   : > { %v1554_v7 = vld [vmem:[%s1913_s20 + $0x8c] sm:$0xf0]  ;;  %v1552_v8 = vld [vmem:[%s1913_s20 + $0x84] sm:$0xf]  ;;  %v1496_v9 = vor.u32 %v1557_v1, %v1493_v2  ;;  %v1469_v10 = vld [vmem:[%s1913_s20 + $0x90] sm:$0xf0] }
  0x4d   : > { %712 = vmatpush.bf16.msra.mxu0 %v1276_v32  ;;  %v1475_v11 = vld [vmem:[%s1913_s20 + $0x88] sm:$0xf]  ;;  %v1555_v12 = vld [vmem:[%s1913_s20 + $0x94] sm:$0xf0]  ;;  %v1553_v13 = vld [vmem:[%s1913_s20 + $0x8c] sm:$0xf]  ;;  %v1468_v15 = vor.u32 %v1554_v7, %v1467_v6  ;;  %v1472_v16 = vor.u32 %v1552_v8, %v1469_v10 }
  0x4e   : > { %725 = vmatpush.bf16.msra.mxu1 %v1280_v36  ;;  %738 = vmatpush.bf16.msra.mxu2 %v1284_v37  ;;  %v1477_v14 = vld [vmem:[%s1913_s20 + $0x98] sm:$0xf0]  ;;  %v1476_v17 = vor.u32 %v1555_v12, %v1475_v11  ;;  %v1451_v18 = vld [vmem:[%s1913_s20 + $0x60] sm:$0xf]  ;;  %v1550_v19 = vld [vmem:[%s1913_s20 + $0x6c] sm:$0xf0] }
  0x4f   : > { %751 = vmatpush.bf16.msra.mxu3 %v1288_v41  ;;  %v1548_v20 = vld [vmem:[%s1913_s20 + $0x64] sm:$0xf]  ;;  %v1480_v21 = vor.u32 %v1553_v13, %v1477_v14  ;;  %v1453_v22 = vld [vmem:[%s1913_s20 + $0x70] sm:$0xf0]  ;;  %v1459_v23 = vld [vmem:[%s1913_s20 + $0x68] sm:$0xf]  ;;  %v1452_v27 = vor.u32 %v1550_v19, %v1451_v18 }
  0x50   : > { %713 = vmatmul.bf16.vlgmr.msra.gmra.mxu0 %v479_v52  ;;  %v1551_v24 = vld [vmem:[%s1913_s20 + $0x74] sm:$0xf0]  ;;  %v1549_v25 = vld [vmem:[%s1913_s20 + $0x6c] sm:$0xf]  ;;  %v1461_v26 = vld [vmem:[%s1913_s20 + $0x78] sm:$0xf0]  ;;  %v1456_v28 = vor.u32 %v1548_v20, %v1453_v22 }
  0x51   : > { %917 = vmatpush.bf16.msrb.mxu0 %v1516_v42  ;;  %726 = vmatmul.bf16.vlgmr.msra.gmra.mxu1 %v479_v52  ;;  %v1460_v29 = vor.u32 %v1551_v24, %v1459_v23  ;;  %v1435_v30 = vld [vmem:[%s1913_s20 + $0x40] sm:$0xf]  ;;  %v1546_v31 = vld [vmem:[%s1913_s20 + $0x4c] sm:$0xf0]  ;;  %v1544_v32 = vld [vmem:[%s1913_s20 + $0x44] sm:$0xf]  ;;  %v1464_v33 = vor.u32 %v1549_v25, %v1461_v26 }
  0x52   : > { %930 = vmatpush.bf16.msrb.mxu1 %v1520_v43  ;;  %943 = vmatpush.bf16.msrb.mxu2 %v1524_v44  ;;  %v1437_v34 = vld [vmem:[%s1913_s20 + $0x50] sm:$0xf0]  ;;  %v1443_v35 = vld [vmem:[%s1913_s20 + $0x48] sm:$0xf]  ;;  %v1547_v36 = vld [vmem:[%s1913_s20 + $0x54] sm:$0xf0]  ;;  %v1436_v39 = vor.u32 %v1546_v31, %v1435_v30 }
  0x53   : > { %956 = vmatpush.bf16.msrb.mxu3 %v1528_v48  ;;  %739 = vmatmul.bf16.vlgmr.msra.gmra.mxu2 %v479_v52  ;;  %v1545_v37 = vld [vmem:[%s1913_s20 + $0x4c] sm:$0xf]  ;;  %v1445_v38 = vld [vmem:[%s1913_s20 + $0x58] sm:$0xf0]  ;;  %v1440_v40 = vor.u32 %v1544_v32, %v1437_v34  ;;  %v1444_v41 = vor.u32 %v1547_v36, %v1443_v35  ;;  %v1419_v42 = vld [vmem:[%s1913_s20 + $0x20] sm:$0xf] }
  0x54   : > { %752 = vmatmul.bf16.vlgmr.msra.gmra.mxu3 %v479_v52  ;;  %v1542_v43 = vld [vmem:[%s1913_s20 + $0x2c] sm:$0xf0]  ;;  %v1540_v44 = vld [vmem:[%s1913_s20 + $0x24] sm:$0xf]  ;;  %v1448_v45 = vor.u32 %v1545_v37, %v1445_v38  ;;  %v1421_v46 = vld [vmem:[%s1913_s20 + $0x30] sm:$0xf0] }
  0x55   : > { %918 = vmatpush.bf16.msrb.mxu0 %v1500_v55  ;;  %v1427_v47 = vld [vmem:[%s1913_s20 + $0x28] sm:$0xf]  ;;  %v1543_v48 = vld [vmem:[%s1913_s20 + $0x34] sm:$0xf0]  ;;  %v1541_v49 = vld [vmem:[%s1913_s20 + $0x2c] sm:$0xf]  ;;  %v1420_v51 = vor.u32 %v1542_v43, %v1419_v42  ;;  %v1424_v52 = vor.u32 %v1540_v44, %v1421_v46 }
  0x56   : > { %931 = vmatpush.bf16.msrb.mxu1 %v1504_v56  ;;  %944 = vmatpush.bf16.msrb.mxu2 %v1508_v57  ;;  %v1429_v50 = vld [vmem:[%s1913_s20 + $0x38] sm:$0xf0]  ;;  %v1428_v53 = vor.u32 %v1543_v48, %v1427_v47  ;;  %v1403_v54 = vld [vmem:[%s1913_s20] sm:$0xf]  ;;  %v1538_v55 = vld [vmem:[%s1913_s20 + $0xc] sm:$0xf0] }
  0x57   : > { %957 = vmatpush.bf16.msrb.mxu3 %v1512_v61  ;;  %v1536_v56 = vld [vmem:[%s1913_s20 + $0x4] sm:$0xf]  ;;  %v1432_v57 = vor.u32 %v1541_v49, %v1429_v50  ;;  %v1405_v58 = vld [vmem:[%s1913_s20 + $0x10] sm:$0xf0]  ;;  %v1411_v59 = vld [vmem:[%s1913_s20 + $0x8] sm:$0xf]  ;;  %v1404_v63 = vor.u32 %v1538_v55, %v1403_v54 }
  0x58   : > { %v1539_v60 = vld [vmem:[%s1913_s20 + $0x14] sm:$0xf0]  ;;  %v1537_v61 = vld [vmem:[%s1913_s20 + $0xc] sm:$0xf]  ;;  %v1413_v62 = vld [vmem:[%s1913_s20 + $0x18] sm:$0xf0]  ;;  %v1408_v1 = vor.u32 %v1536_v56, %v1405_v58 }
  0x59   : > { %919 = vmatpush.bf16.msrb.mxu0 %v1484_v3  ;;  %v476_v0 = vld [vmem:[#allocation2] sm:$0xff]  ;;  %v1412_v2 = vor.u32 %v1539_v60, %v1411_v59  ;;  %v1416_v3 = vor.u32 %v1537_v61, %v1413_v62 }
  0x5a   : > { %932 = vmatpush.bf16.msrb.mxu1 %v1488_v4  ;;  %945 = vmatpush.bf16.msrb.mxu2 %v1492_v5  ;;  %v477_v4 = vpack.c.bf16 %v476_v0, %v476_v0  ;;  %v969_v13 = vld [vmem:[%s1940_s11] sm:$0xf] }
  0x5b   : > { %958 = vmatpush.bf16.msrb.mxu3 %v1496_v9  ;;  %v971_v14 = vperm.slane %v969_v13, 0  ;;  %v974_v25 = vperm.slane %v969_v13, 3  ;;  %v480_v60 = vld [vmem:[%s451_s12] sm:$0xff] }
  0x5d   : > { %920 = vmatpush.bf16.msrb.mxu0 %v1468_v15 }
  0x5e   : > { %933 = vmatpush.bf16.msrb.mxu1 %v1472_v16  ;;  %946 = vmatpush.bf16.msrb.mxu2 %v1476_v17  ;;  %v972_v16 = vperm.slane %v969_v13, 1 }
  0x5f   : > { %959 = vmatpush.bf16.msrb.mxu3 %v1480_v21 }
  0x61   : > { %921 = vmatpush.bf16.msrb.mxu0 %v1452_v27 }
  0x62   : > { %934 = vmatpush.bf16.msrb.mxu1 %v1456_v28  ;;  %947 = vmatpush.bf16.msrb.mxu2 %v1460_v29 }
  0x63   : > { %960 = vmatpush.bf16.msrb.mxu3 %v1464_v33 }
  0x65   : > { %922 = vmatpush.bf16.msrb.mxu0 %v1436_v39  ;;  %v973_v39 = vperm.slane %v969_v13, 2 }
  0x66   : > { %935 = vmatpush.bf16.msrb.mxu1 %v1440_v40  ;;  %948 = vmatpush.bf16.msrb.mxu2 %v1444_v41 }
  0x67   : > { %961 = vmatpush.bf16.msrb.mxu3 %v1448_v45 }
  0x69   : > { %923 = vmatpush.bf16.msrb.mxu0 %v1420_v51 }
  0x6a   : > { %936 = vmatpush.bf16.msrb.mxu1 %v1424_v52  ;;  %949 = vmatpush.bf16.msrb.mxu2 %v1428_v53 }
  0x6b   : > { %962 = vmatpush.bf16.msrb.mxu3 %v1432_v57 }
  0x6d   : > { %924 = vmatpush.bf16.msrb.mxu0 %v1404_v63 }
  0x6e   : > { %937 = vmatpush.bf16.msrb.mxu1 %v1408_v1  ;;  %950 = vmatpush.bf16.msrb.mxu2 %v1412_v2 }
  0x6f   : > { %963 = vmatpush.bf16.msrb.mxu3 %v1416_v3 }
  0x70   : > { %925 = vmatmul.bf16.vlgmr.msrb.gmra.mxu0 %v477_v4 }
  0x71   : > { %938 = vmatmul.bf16.vlgmr.msrb.gmra.mxu1 %v477_v4  ;;  %951 = vmatmul.bf16.vlgmr.msrb.gmra.mxu2 %v477_v4 }
  0x72   : > { %964 = vmatmul.bf16.vlgmr.msrb.gmra.mxu3 %v477_v4 }
  0xcd   : > { %v714_v5 = vpop.f32.mrf.mxu0 }
  0xce   : > { %v727_v6 = vpop.f32.mrf.mxu1 }
  0xd5   : > { %v716_v8 = vpop.f32.mrf.mxu0 }
  0xd6   : > { %v740_v9 = vpop.f32.mrf.mxu2  ;;  %v729_v10 = vpop.f32.mrf.mxu1 }
  0xd7   : > { %v753_v7 = vpop.f32.mrf.mxu3 }
  0xde   : > { %v742_v12 = vpop.f32.mrf.mxu2 }
  0xdf   : > { %v755_v11 = vpop.f32.mrf.mxu3 }
  0xed   : > { %v926_v15 = vpop.f32.mrf.mxu0 }
  0xee   : > { %v927_v17 = vadd.f32 %v926_v15, %v714_v5  ;;  %v939_v18 = vpop.f32.mrf.mxu1 }
  0xef   : > { %v940_v19 = vadd.f32 %v939_v18, %v727_v6 }
  0xf0   : > { %v979_v20 = vadd.f32 %v971_v14, %v927_v17 }
  0xf1   : > { %v980_v21 = vadd.f32 %v972_v16, %v940_v19 }
  0xf2   : > { %v1529_v22 = vmul.f32 -1.442695, %v979_v20 }
  0xf3   : > { %v1530_v23 = vmul.f32 -1.442695, %v980_v21 }
  0xf4   : > { %1662 = vpow2.f32 %v1529_v22  ;;  %v952_v24 = vpop.f32.mrf.mxu2 }
  0xf5   : > { %1664 = vpow2.f32 %v1530_v23  ;;  %v965_v26 = vpop.f32.mrf.mxu3  ;;  %v928_v27 = vpop.f32.mrf.mxu0  ;;  %v953_v38 = vadd.f32 %v952_v24, %v740_v9 }
  0xf6   : > { %v966_v28 = vadd.f32 %v965_v26, %v753_v7  ;;  %v941_v29 = vpop.f32.mrf.mxu1 }
  0xf7   : > { %v981_v42 = vadd.f32 %v973_v39, %v953_v38 }
  0xf8   : > { %v982_v30 = vadd.f32 %v974_v25, %v966_v28 }
  0xfa   : > { %v1663_v31 = vpop.eup %1662  ;;  %v1531_v32 = vmul.f32 -1.442695, %v982_v30 }
  0xfb   : > { %v1665_v33 = vpop.eup %1664  ;;  %v986_v34 = vadd.f32 1.0, %v1663_v31 }
  0xfc   : > { %v1005_v35 = vadd.f32 1.0, %v1665_v33  ;;  %1666 = vpow2.f32 %v1531_v32  ;;  %v954_v36 = vpop.f32.mrf.mxu2 }
  0xfd   : > { %1668 = vrcp.f32 %v986_v34  ;;  %v967_v37 = vpop.f32.mrf.mxu3  ;;  %v998_v49 = vand.u32 2147483648, %v986_v34  ;;  %v996_v52 = vand.u32 2147483647, %v986_v34  ;;  %vm992_vm2 = vweird.f32 %v986_v34 }
  0xfe   : > { %1670 = vrcp.f32 %v1005_v35  ;;  %v1017_v50 = vand.u32 2147483648, %v1005_v35  ;;  %v1015_v54 = vand.u32 2147483647, %v1005_v35  ;;  %vm1011_vm3 = vweird.f32 %v1005_v35 }
  0xff   : > { %v999_v57 = vor.u32 1.1754944e-38, %v998_v49  ;;  %vm997_vm6 = vcmp.eq.f32.partialorder %v996_v52, 8.507059e+37 }
 0x100   : > { %v1018_v59 = vor.u32 1.1754944e-38, %v1017_v50  ;;  %vm1016_vm7 = vcmp.eq.f32.partialorder %v1015_v54, 8.507059e+37 }
 0x102   : > { %v1667_v40 = vpop.eup %1666 }
 0x103   : > { %v1669_v41 = vpop.eup %1668  ;;  %v1025_v43 = vadd.f32 1.0, %v1667_v40 }
 0x104   : > { %v1671_v44 = vpop.eup %1670  ;;  %v988_v45 = vmul.f32 %v1669_v41, %v986_v34  ;;  %vm993_vm0 = vweird.f32 %v1669_v41 }
 0x105   : > { %v1007_v46 = vmul.f32 %v1671_v44, %v1005_v35  ;;  %1672 = vrcp.f32 %v1025_v43  ;;  %vm1012_vm1 = vweird.f32 %v1671_v44  ;;  %vm994_vm4 = vmor %vm992_vm2, %vm993_vm0  ;;  %v1037_v9 = vand.u32 2147483648, %v1025_v43 }
 0x106   : > { %v989_v47 = vsub.f32 1.0, %v988_v45  ;;  %1674 = vtanh.f32 %v981_v42  ;;  %vm1013_vm5 = vmor %vm1011_vm3, %vm1012_vm1  ;;  %vm1031_vm9 = vweird.f32 %v1025_v43  ;;  %v1035_v10 = vand.u32 2147483647, %v1025_v43 }
 0x107   : > { %v1008_v48 = vsub.f32 1.0, %v1007_v46  ;;  %v1038_v12 = vor.u32 1.1754944e-38, %v1037_v9 }
 0x108   : > { %v990_v51 = vmul.f32 %v1669_v41, %v989_v47  ;;  %vm1036_vm11 = vcmp.eq.f32.partialorder %v1035_v10, 8.507059e+37 }
 0x109   : > { %v1009_v53 = vmul.f32 %v1671_v44, %v1008_v48 }
 0x10a   : > { %v991_v55 = vadd.f32 %v1669_v41, %v990_v51 }
 0x10b   : > { %v1673_v56 = vpop.eup %1672  ;;  %v1010_v58 = vadd.f32 %v1671_v44, %v1009_v53 }
 0x10c   : > { %v995_v61 = vsel %vm994_vm4, %v1669_v41, %v991_v55  ;;  %v1027_v62 = vmul.f32 %v1673_v56, %v1025_v43  ;;  %v1675_v63 = vpop.eup %1674  ;;  %vm1032_vm8 = vweird.f32 %v1673_v56 }
 0x10d   : > { %v1000_v0 = vsel %vm997_vm6, %v999_v57, %v995_v61  ;;  %v1014_v1 = vsel %vm1013_vm5, %v1671_v44, %v1010_v58  ;;  %vm1033_vm10 = vmor %vm1031_vm9, %vm1032_vm8 }
 0x10e   : > { %v1019_v2 = vsel %vm1016_vm7, %v1018_v59, %v1014_v1  ;;  %v1042_v3 = vmul.f32 %v1675_v63, %v1000_v0  ;;  %v1028_v4 = vsub.f32 1.0, %v1027_v62 }
 0x10f   : > { %v1041_v5 = vmul.f32 %v1019_v2, %v480_v60 }
 0x110   : > { %v1029_v6 = vmul.f32 %v1673_v56, %v1028_v4 }
 0x111   : > { %v1043_v7 = vadd.f32 %v1042_v3, %v1041_v5 }
 0x112   : > { %v1030_v8 = vadd.f32 %v1673_v56, %v1029_v6 }
 0x113   : > { %1676 = vtanh.f32 %v1043_v7  ;;  %1047 = vst [vmem:[%s469_s15] sm:$0xff] %v1043_v7 }
 0x114   : > { %v1034_v11 = vsel %vm1033_vm10, %v1673_v56, %v1030_v8 }
 0x115   : > { %v1039_v14 = vsel %vm1036_vm11, %v1038_v12, %v1034_v11 }
 0x119   : > { %v1677_v13 = vpop.eup %1676 }
 0x11a   : > { %v1045_v15 = vmul.f32 %v1677_v13, %v1039_v14 }
 0x11c   : > { %1046 = vst [vmem:[%s462_s19] sm:$0xff] %v1045_v15 }
 0x11d   : > { %1048 = vst [vmem:[#allocation2] sm:$0xff] %v1045_v15 }
 0x11e PF: > { %s24_s29 = sadd.s32 1, %s1792_s29   ;;  %s2139_s12 = sld [smem:[#allocation11_spill]] }
 0x11f   : > { %p21_p1 = scmp.ge.s32.totalorder %s24_s29, 4   ;;  %s2140_s27 = sld [smem:[#allocation9_spill]] }
 0x120   : > { %s2141_s28 = sld [smem:[#allocation10_spill]]  ;;  %s2142_s24 = smov %s1776_s25 }
 0x121   : > { %s2143_s25 = smov %s1780_s26  ;;  %23 = sbr.rel (!%p21_p1) target bundleno = 8 (0x8), region = 125 }
 0x124   : > { %s2144_s26 = smov %s2139_s12 }
 0x126   :  { %1094 = vsyncpa [#allocation4], 1 }
 0x127   :  { %1096 = vsyncpa [#allocation4 + $0x1], 1 }
 0x128   :  { %1097 = vsyncpa [#allocation6], 1 }
 0x129   :  { %1099 = vsyncpa [#allocation6 + $0x1], 1 }

</bundles_post_ra>
